<compile_context>
chip_gen: v6e
topology: v6e:2x2x1
jax: 0.10.0
libtpu: 0.0.40
codegen_flags: <defaults>
</compile_context>

<pallas_src>
import jax
import jax.numpy as jnp
from jax.experimental import pallas as pl
from jax.experimental.pallas import tpu as pltpu


def _rope_kernel_full(pos_ref, invf_ref, cos_ref, sin_ref):
    # pos_ref:  (1, TS, 1)    int32   -- position ids, seq on sublane axis
    # invf_ref: (1, 1, dim)   float32 -- inv_freq already duplicated (cat(f,f))
    # cos_ref / sin_ref: (1, TS, dim) in x.dtype
    pos = pos_ref[...].astype(jnp.float32)            # (1, TS, 1)
    freqs = pos * invf_ref[...]                       # VPU broadcast-mul
    cos_ref[...] = jnp.cos(freqs).astype(cos_ref.dtype)
    sin_ref[...] = jnp.sin(freqs).astype(sin_ref.dtype)


def _rope_kernel_half(pos_ref, invf_ref, cos_ref, sin_ref):
    # pos_ref:  (1, TS, 1)       int32
    # invf_ref: (1, 1, dim//2)   float32 (NOT duplicated)  -- only for dim >= 256
    # cos_ref / sin_ref: (1, TS, dim) in x.dtype
    pos = pos_ref[...].astype(jnp.float32)            # (1, TS, 1)
    freqs = pos * invf_ref[...]                       # (1, TS, half) f32
    # Trig in f32; cast BEFORE the mirror so the concat and store move packed
    # (e.g. bf16) vregs — halves vreg traffic + vst pressure when x is bf16.
    c = jnp.cos(freqs).astype(cos_ref.dtype)
    s = jnp.sin(freqs).astype(sin_ref.dtype)
    # emb = cat(freqs, freqs) -> the two halves of cos/sin are identical.
    cos_ref[...] = jnp.concatenate([c, c], axis=-1)
    sin_ref[...] = jnp.concatenate([s, s], axis=-1)


def _choose_seq_tile(S, dim, out_itemsize, seq_tile, batch):
    """Pick a sequence tile: big (amortize step overhead), VMEM-safe, mult of 8."""
    TS = min(seq_tile, S)
    # VMEM budget for the pipelined outputs: 2 outputs x 2 double-buffers of
    # (1, TS, dim).  Keep under ~12 MiB so v5e's 16 MiB default scoped VMEM is
    # safe; v6e (32 MiB scoped) and v7x (64 MiB physical) have plenty of room.
    budget_bytes = 12 * 1024 * 1024
    bytes_per_row = dim * out_itemsize * 4            # 2 outs x 2 buffers
    TS = min(TS, max(8, budget_bytes // bytes_per_row))
    # v7x has 2 TensorCores sharded over "parallel" grid axes: with B == 1 make
    # sure there are at least 2 sequence tiles so both cores get work.
    if batch == 1 and TS >= S and S >= 16:
        TS = (S + 1) // 2
    # Sublane rule: a block dim must be divisible by 8 or equal the full dim.
    if TS < S:
        TS = max(8, (TS // 8) * 8)
    return TS


def llama_rotary_embedding(x, position_ids, dim, base=10000.0, seq_tile=8192):
    """Returns (cos, sin), each of shape (B, S, dim) and dtype == x.dtype."""
    assert dim % 2 == 0, "dim must be even (matches torch arange(0, dim, 2))"
    B, S = position_ids.shape
    half = dim // 2
    out_dtype = x.dtype

    TS = _choose_seq_tile(S, dim, jnp.dtype(out_dtype).itemsize, seq_tile, B)

    # Parameter setup (matches nn.Module __init__).
    inv_freq = 1.0 / (base ** (jnp.arange(0, dim, 2, dtype=jnp.float32) / dim))
    if dim >= 256:
        # half >= 128 lanes: half-width trig genuinely saves vregs; mirror in
        # the kernel.  Pass inv_freq un-duplicated.
        kernel = _rope_kernel_half
        invf_arr = inv_freq.reshape(1, 1, half)
        invf_spec = pl.BlockSpec((1, 1, half), lambda b, s: (0, 0, 0))
    else:
        # half < 128 lanes (e.g. head_dim=128): half-width trig saves nothing
        # (lane padding) and the concat costs a relayout — go full width.
        kernel = _rope_kernel_full
        invf_arr = jnp.concatenate([inv_freq, inv_freq]).reshape(1, 1, dim)
        invf_spec = pl.BlockSpec((1, 1, dim), lambda b, s: (0, 0, 0))

    # int32 positions with S on the sublane axis (broadcast across lanes is a
    # cheap splat); cast to f32 inside the kernel.  Note: f32 positions lose
    # exactness above 2^24 — same as the PyTorch reference.
    pos = position_ids.astype(jnp.int32).reshape(B, S, 1)

    out_shape = (
        jax.ShapeDtypeStruct((B, S, dim), out_dtype),
        jax.ShapeDtypeStruct((B, S, dim), out_dtype),
    )

    grid = (B, pl.cdiv(S, TS))

    cos, sin = pl.pallas_call(
        kernel,
        out_shape=out_shape,
        grid_spec=pltpu.PrefetchScalarGridSpec(
            num_scalar_prefetch=0,
            grid=grid,
            in_specs=[
                pl.BlockSpec((1, TS, 1), lambda b, s: (b, s, 0)),
                invf_spec,
            ],
            out_specs=[
                pl.BlockSpec((1, TS, dim), lambda b, s: (b, s, 0)),
                pl.BlockSpec((1, TS, dim), lambda b, s: (b, s, 0)),
            ],
        ),
        compiler_params=pltpu.CompilerParams(
            dimension_semantics=("parallel", "parallel"),
        ),
    )(pos, invf_arr)
    return cos, sin


def _reference(x, position_ids, dim, base=10000.0):
    # Pure-JAX reference mirroring the PyTorch forward exactly.
    inv_freq = 1.0 / (base ** (jnp.arange(0, dim, 2, dtype=jnp.float32) / dim))
    pos = position_ids.astype(jnp.float32)                       # (B, S)
    freqs = pos[:, :, None] * inv_freq[None, None, :]            # (B, S, dim/2)
    emb = jnp.concatenate([freqs, freqs], axis=-1)               # (B, S, dim)
    return jnp.cos(emb).astype(x.dtype), jnp.sin(emb).astype(x.dtype)


if __name__ == "__main__":
    key = jax.random.PRNGKey(0)
    kx, kx2 = jax.random.split(key)

    # Case 1: Llama-style head_dim=128 (full-width kernel path), f32.
    B, H, S, dim = 2, 4, 8, 128
    x = jax.random.normal(kx, (B, H, S, dim), dtype=jnp.float32)
    position_ids = jnp.tile(jnp.arange(S, dtype=jnp.int32)[None, :], (B, 1))

    cos, sin = llama_rotary_embedding(x, position_ids, dim)
    cos, sin = jax.block_until_ready((cos, sin))

    cos_ref, sin_ref = _reference(x, position_ids, dim)
    assert cos.shape == (B, S, dim) and sin.shape == (B, S, dim)
    assert cos.dtype == x.dtype and sin.dtype == x.dtype
    assert jnp.allclose(cos, cos_ref, atol=1e-5, rtol=1e-5)
    assert jnp.allclose(sin, sin_ref, atol=1e-5, rtol=1e-5)

    # Case 2: dim=256 (half-dim + mirror path), bf16 output, B=1 (exercises
    # the >=2-seq-tile megacore split: TS = 16, grid = (1, 2)).
    B2, S2, dim2 = 1, 32, 256
    x2 = jax.random.normal(kx2, (B2, 2, S2, dim2), dtype=jnp.bfloat16)
    pos2 = jnp.tile(jnp.arange(S2, dtype=jnp.int32)[None, :], (B2, 1))

    cos2, sin2 = llama_rotary_embedding(x2, pos2, dim2)
    cos2, sin2 = jax.block_until_ready((cos2, sin2))

    cos2_ref, sin2_ref = _reference(x2, pos2, dim2)
    assert cos2.shape == (B2, S2, dim2) and sin2.shape == (B2, S2, dim2)
    assert cos2.dtype == x2.dtype and sin2.dtype == x2.dtype
    assert jnp.allclose(cos2.astype(jnp.float32), cos2_ref.astype(jnp.float32),
                        atol=1e-2, rtol=1e-2)
    assert jnp.allclose(sin2.astype(jnp.float32), sin2_ref.astype(jnp.float32),
                        atol=1e-2, rtol=1e-2)

    print("KERNEL_OK")
</pallas_src>

<mosaic_0001>
module attributes {stable_mosaic.version = 11 : i64} {
  func.func @_rope_kernel_full(%arg0: i32, %arg1: i32, %arg2: memref<1x8x1xi32, #tpu.memory_space<vmem>>, %arg3: memref<1x1x128xf32, #tpu.memory_space<vmem>>, %arg4: memref<1x8x128xf32, #tpu.memory_space<vmem>>, %arg5: memref<1x8x128xf32, #tpu.memory_space<vmem>>) attributes {dimension_semantics = [#tpu.dimension_semantics<parallel>, #tpu.dimension_semantics<parallel>], iteration_bounds = array<i64: 2, 1>, scalar_prefetch = 0 : i64, scratch_operands = 0 : i64, tpu.core_type = #tpu.core_type<tc>, window_params = [{transform_indices = @transform_0, window_bounds = array<i64: 1, 8, 1>}, {pipeline_mode = #tpu.pipeline_mode<synchronous>, transform_indices = @transform_1, window_bounds = array<i64: 1, 1, 128>}, {transform_indices = @transform_2, window_bounds = array<i64: 1, 8, 128>}, {transform_indices = @transform_3, window_bounds = array<i64: 1, 8, 128>}]} {
    %c0 = arith.constant 0 : index
    %c0_0 = arith.constant 0 : index
    %c0_1 = arith.constant 0 : index
    %0 = vector.load %arg2[%c0, %c0_0, %c0_1] : memref<1x8x1xi32, #tpu.memory_space<vmem>>, vector<1x8x1xi32>
    %1 = arith.sitofp %0 : vector<1x8x1xi32> to vector<1x8x1xf32>
    %c0_2 = arith.constant 0 : index
    %c0_3 = arith.constant 0 : index
    %c0_4 = arith.constant 0 : index
    %2 = vector.load %arg3[%c0_2, %c0_3, %c0_4] : memref<1x1x128xf32, #tpu.memory_space<vmem>>, vector<1x1x128xf32>
    %3 = vector.broadcast %1 : vector<1x8x1xf32> to vector<1x8x128xf32>
    %4 = vector.broadcast %2 : vector<1x1x128xf32> to vector<1x8x128xf32>
    %5 = arith.mulf %3, %4 : vector<1x8x128xf32>
    %6 = math.cos %5 : vector<1x8x128xf32>
    %c0_5 = arith.constant 0 : index
    %c0_6 = arith.constant 0 : index
    %c0_7 = arith.constant 0 : index
    %7 = vector.load %arg4[%c0_5, %c0_6, %c0_7] : memref<1x8x128xf32, #tpu.memory_space<vmem>>, vector<1x8x128xf32>
    tpu.vector_store %arg4[%c0_5, %c0_6, %c0_7], %6 {strides = array<i32>} : memref<1x8x128xf32, #tpu.memory_space<vmem>>, vector<1x8x128xf32>,
    %8 = math.sin %5 : vector<1x8x128xf32>
    %c0_8 = arith.constant 0 : index
    %c0_9 = arith.constant 0 : index
    %c0_10 = arith.constant 0 : index
    %9 = vector.load %arg5[%c0_8, %c0_9, %c0_10] : memref<1x8x128xf32, #tpu.memory_space<vmem>>, vector<1x8x128xf32>
    tpu.vector_store %arg5[%c0_8, %c0_9, %c0_10], %8 {strides = array<i32>} : memref<1x8x128xf32, #tpu.memory_space<vmem>>, vector<1x8x128xf32>,
    return
  }
  func.func @transform_0(%arg0: i32, %arg1: i32) -> (i32, i32, i32) {
    %c0_i32 = arith.constant 0 : i32
    %c0_i32_0 = arith.constant 0 : i32
    return %arg0, %arg1, %c0_i32 : i32, i32, i32
  }
  func.func @transform_1(%arg0: i32, %arg1: i32) -> (i32, i32, i32) {
    %c0_i32 = arith.constant 0 : i32
    %c0_i32_0 = arith.constant 0 : i32
    %c0_i32_1 = arith.constant 0 : i32
    %c0_i32_2 = arith.constant 0 : i32
    return %c0_i32, %c0_i32_0, %c0_i32_1 : i32, i32, i32
  }
  func.func @transform_2(%arg0: i32, %arg1: i32) -> (i32, i32, i32) {
    %c0_i32 = arith.constant 0 : i32
    %c0_i32_0 = arith.constant 0 : i32
    return %arg0, %arg1, %c0_i32 : i32, i32, i32
  }
  func.func @transform_3(%arg0: i32, %arg1: i32) -> (i32, i32, i32) {
    %c0_i32 = arith.constant 0 : i32
    %c0_i32_0 = arith.constant 0 : i32
    return %arg0, %arg1, %c0_i32 : i32, i32, i32
  }
}

</mosaic_0001>

<bundles_post_ra>
// kernel: tpu_custom_call.1
= control target key start
LH: loop header
LB: loop body
LE: loop exit
PB: predicated region body
PF: predicated region fallthrough
CT: control target
= control target key end

     0   :  { %9 = vsyncpa [#allocation3], 0  ;;  %s969_s0 = inlined_call_operand.vmem [shape: s32[2,8,1], index: 0, kind: input, shape index: {}]   ;;  %s970_s1 = inlined_call_operand.vmem [shape: f32[1,1,128], index: 1, kind: input, shape index: {}]   ;;  %s971_s2 = inlined_call_operand.hbm [shape: f32[2,8,128], index: 2, kind: output, shape index: {0}]   ;;  %s972_s3 = inlined_call_operand.hbm [shape: f32[2,8,128], index: 3, kind: output, shape index: {1}]  }
   0x1   :  { %11 = vsyncpa [#allocation3 + $0x1], 0 }
   0x2   :  { %12 = vsyncpa [#allocation5], 0 }
   0x3   :  { %14 = vsyncpa [#allocation5 + $0x1], 0  ;;  %s802_s12 = smov 0   ;;  %s804_s13 = smov 0  }
   0x4   :  { %s806_s14 = smov 0   ;;  %s808_s15 = smov 0  }
   0x5   :  { %s810_s16 = smov 0   ;;  %s812_s17 = smov 0  }
   0x6 LB: > { %s566_s18 = sadd.s32 4294967295, %s771_s17   ;;  %s567_s19 = sadd.s32 4294967294, %s771_s17   ;;  %s771_s17 = sphi %s812_s17, %s20_s17   ;;  %s767_s16 = sphi %s810_s16, %s979_s16   ;;  %s763_s15 = sphi %s808_s15, %s978_s15   ;;  %s759_s14 = sphi %s806_s14, %s977_s14   ;;  %s755_s13 = sphi %s804_s13, %s976_s13   ;;  %s751_s12 = sphi %s802_s12, %s975_s12  }
   0x7   : > { %s32_s20 = sadd.s32 1, %s767_s16  ;;  %s90_s21 = sadd.s32 1, %s759_s14 }
   0x8   : > { %p34_p0 = scmp.ge.s32.totalorder %s32_s20, 2  ;;  %p100_p1 = scmp.ne.s32.totalorder %s759_s14, %s755_s13 }
   0x9   : > { %p101_p2 = scmp.eq.s32.totalorder %s566_s18, 1  ;;  %p106_p3 = scmp.ne.s32.totalorder %s755_s13, %s751_s12 }
   0xa   : > { %s981_s20 = smov (%p34_p0, %s32_s20), 0  ;;  %p107_p5 = scmp.eq.s32.totalorder %s567_s19, 1 }
   0xb   : > { %p842_p4 = por %p101_p2, %p100_p1  ;;  %s85_s23 = ssub.s32 %s767_s16, %s981_s20 }
   0xc   : > { %p570_p6 = scmp.ge.s32.totalorder %s771_s17, 1  ;;  %p88_p7 = scmp.eq.s32.totalorder %s85_s23, 0 }
   0xd   : > { %p849_p8 = por %p107_p5, %p106_p3  ;;  %p166_p9 = scmp.lt.s32.totalorder %s771_s17, 3 }
   0xe   : > { %s855_s25 = scalar_select %p88_p7, %s759_s14, %s90_s21  }
   0xf   : > { %p167_p10 = pnand %p570_p6, %p166_p9 }
  0x10   : > { %p197_p11 = scmp.lt.s32.totalorder (!%p167_p10), %s763_s15, 1  ;;  %s886_s6 = sand.u32 (!%p167_p10), 1, %s755_s13  }
  0x11   : > { %170 = sbr.rel (%p167_p10) target bundleno = 272 (0x110), region = 28  ;;  %s571_s7 = sshll.u32 (!%p167_p10), %s886_s6, 3 }
  0x12   : > { %s585_s8 = sshll.u32 (!%p167_p10), %s763_s15, 7  ;;  %s189_s9 = scalar_lea.vmem (!%p167_p10), [#allocation2], %s571_s7 }
  0x13   : > { %s448_s10 = sshll.u32 (!%p167_p10), %s189_s9, 4  ;;  %s196_s11 = scalar_lea.vmem (!%p167_p10), [#allocation4], %s571_s7  ;;  %s896_s10 = int_to_ptr.vmem [resolvable:$true] %s448_s10 }
  0x14   : > { %s462_s18 = sshll.u32 (!%p167_p10), %s196_s11, 4  ;;  %s893_s23 = scalar_lea.hbm (!%p167_p10), %s971_s2, %s585_s8  ;;  %s903_s18 = int_to_ptr.vmem [resolvable:$true] %s462_s18 }
  0x15   : > { %s429_s28 = scalar_lea.sflag (!%p167_p10), [#allocation3], %s886_s6  ;;  %s665_s29 = scalar_lea.vmem (!%p167_p10), %s896_s10, 128 }
  0x16   : > { %v773_v0 = vmov 0   ;;  %s198_s26 = scalar_select %p197_p11, %s763_s15, 1  ;;  %v574_v3 = vld [vmem:[%s970_s1] ss:$0 sm:$0xff]  ;;  %v774_v16 = vmov 683565275  }
  0x17   : > { %660 = vset.pattern.permute.xlu0 %v773_v0  ;;  %v775_v18 = vmov 2475754826   ;;  %v776_v21 = vmov 2131351028   ;;  %v777_v24 = vmov 2102212464   ;;  %p666_p12 = scmp.ne.s32.totalorder %s896_s10, %s665_s29 }
  0x18   : > { %s573_s27 = sshll.u32 %s198_s26, 3  ;;  %v778_v27 = vmov 920167782   ;;  %v779_v30 = vmov 1326507024  }
  0x19   : > { %s203_s30 = scalar_lea.vmem %s969_s0, %s573_s27  ;;  %s901_s27 = scalar_lea.hbm %s972_s3, %s585_s8 }
  0x1a   : > { %v204_v1 = vld [vmem:[%s203_s30] sm:$0xff]  ;;  %p667_p13 = pnand %p666_p12, %p842_p4  ;;  %s780_s30 = smov [#allocation2]  }
  0x1b   : > { %v205_v2 = vcvt.s32.f32 %v204_v1  ;;  %s669_s4 = sshll.u32 %s780_s30, 4  ;;  %s670_s4 = int_to_ptr.vmem [resolvable:$false] %s669_s4 }
  0x1c   : > { %p668_p0 = pneg %p667_p13  ;;  %s671_s5 = scalar_lea.vmem %s670_s4, 256 }
  0x1d   : > { %209 = vperm.xlu0 %660, %v205_v2   ;;  %p672_p1 = scmp.lt.s32.totalorder %s896_s10, %s670_s4  ;;  %p673_p2 = scmp.lt.s32.totalorder %s671_s5, %s665_s29 }
  0x1f   : > { %p674_p3 = por %p673_p2, %p672_p1 }
  0x21   : > { %p675_p5 = pnand %p674_p3, %p668_p0 }
  0x98   : > { %v210_v4 = vpop.permute.xlu0 %209 }
  0x99   : > { %v865_v5 = vmul.f32 %v574_v3, %v210_v4 }
  0x9b   : > { %v222_v6 = vand.u32 2139095040, %v865_v5  ;;  %v219_v10 = vand.u32 2147483647, %v865_v5  ;;  %vm221_vm7 = vcmp.lt.s32.totalorder %v865_v5, 0  ;;  %vm311_vm15 = vweird.f32 %v865_v5 }
  0x9d   : > { %v223_v7 = vshrl.u32 %v222_v6, 23  ;;  %v226_v13 = vand.u32 8388607, %v219_v10  ;;  %vm220_vm8 = vcmp.le.f32.partialorder %v219_v10, 0.7853982 }
  0x9f   : > { %v575_v8 = vadd.s32 4294967169, %v223_v7  ;;  %v227_v32 = vor.u32 8388608, %v226_v13 }
  0xa1   : > { %v229_v9 = vadd.s32 1, %v575_v8  ;;  %v267_v46 = vshll.u32 %v227_v32, 8 }
  0xa3   : > { %vm230_vm0 = vcmp.gt.s32.totalorder %v229_v9, 0 }
  0xa4   : > { %v231_v11 = vsel %vm230_vm0, %v229_v9, 0 }
  0xa5   : > { %v233_v12 = vand.u32 31, %v231_v11  ;;  %v232_v15 = vshrl.u32 %v231_v11, 5 }
  0xa7   : > { %v234_v14 = vsub.s32 32, %v233_v12  ;;  %v236_v17 = vshll.u32 %v774_v16, %v233_v12  ;;  %v239_v19 = vshll.u32 %v775_v18, %v233_v12  ;;  %v242_v23 = vshll.u32 %v776_v21, %v233_v12 }
  0xa8   : > { %v245_v26 = vshll.u32 %v777_v24, %v233_v12  ;;  %v248_v29 = vshll.u32 %v778_v27, %v233_v12  ;;  %vm251_vm1 = vcmp.lt.s32.totalorder %v232_v15, 1  ;;  %vm254_vm2 = vcmp.lt.s32.totalorder %v232_v15, 4 }
  0xa9   : > { %v237_v20 = vshrl.u32 %v775_v18, %v234_v14  ;;  %v240_v22 = vshrl.u32 %v776_v21, %v234_v14  ;;  %v243_v25 = vshrl.u32 %v777_v24, %v234_v14  ;;  %v246_v28 = vshrl.u32 %v778_v27, %v234_v14 }
  0xaa   : > { %v249_v31 = vshrl.u32 %v779_v30, %v234_v14  ;;  %v235_v41 = vshrl.u32 %v774_v16, %v234_v14  ;;  %vm253_vm3 = vcmp.lt.s32.totalorder %v232_v15, 3  ;;  %vm252_vm4 = vcmp.lt.s32.totalorder %v232_v15, 2 }
  0xab   : > { %v238_v33 = vor.u32 %v237_v20, %v236_v17  ;;  %v241_v34 = vor.u32 %v240_v22, %v239_v19  ;;  %v244_v35 = vor.u32 %v243_v25, %v242_v23  ;;  %v247_v36 = vor.u32 %v246_v28, %v245_v26 }
  0xac   : > { %v250_v37 = vor.u32 %v249_v31, %v248_v29 }
  0xad   : > { %v256_v38 = vsel %vm254_vm2, %v244_v35, 2102212464  ;;  %v259_v39 = vsel %vm251_vm1, %v238_v33, %v241_v34  ;;  %v263_v40 = vsel %vm251_vm1, %v241_v34, %v244_v35  ;;  %v260_v42 = vsel %vm254_vm2, %v247_v36, 920167782 }
  0xae   : > { %v264_v43 = vsel %vm254_vm2, %v250_v37, 1326507024  ;;  %v261_v44 = vsel %vm253_vm3, %v244_v35, %v260_v42  ;;  %v255_v47 = vsel %vm251_vm1, %v235_v41, %v238_v33  ;;  %v257_v48 = vsel %vm253_vm3, %v241_v34, %v256_v38 }
  0xaf   : > { %v265_v45 = vsel %vm253_vm3, %v247_v36, %v264_v43  ;;  %v262_v49 = vsel %vm252_vm4, %v259_v39, %v261_v44  ;;  %v258_v55 = vsel %vm252_vm4, %v255_v47, %v257_v48 }
  0xb0   : > { %v266_v50 = vsel %vm252_vm4, %v263_v40, %v265_v45  ;;  %v874_v53 = vmul.u32.u64.low %v267_v46, %v262_v49  ;;  %v875_v54 = vmul.u32.u64.high %v267_v46, %v262_v49, %v874_v53  ;;  %v274_v57 = vmul.u32 %v267_v46, %v258_v55 }
  0xb1   : > { %v871_v51 = vmul.u32.u64.low %v267_v46, %v266_v50  ;;  %v872_v52 = vmul.u32.u64.high %v267_v46, %v266_v50, %v871_v51 }
  0xb2   : > { %v277_v56 = vadd.s32 1, %v875_v54 }
  0xb3   : > { %vm276_vm5 = vc.u32 %v872_v52, %v874_v53  ;;  %v275_v6 = vadd.s32 %v874_v53, %v872_v52 }
  0xb4   : > { %v278_v58 = vsel %vm276_vm5, %v277_v56, %v875_v54 }
  0xb5   : > { %v279_v59 = vadd.s32 %v278_v58, %v274_v57 }
  0xb7   : > { %v280_v60 = vadd.s32 536870912, %v279_v59 }
  0xb9   : > { %v281_v61 = vshrl.u32 %v280_v60, 30 }
  0xbb   : > { %v282_v62 = vshll.u32 %v281_v61, 30  ;;  %v305_v20 = vsub.s32 4, %v281_v61 }
  0xbd   : > { %v283_v63 = vsub.s32 %v279_v59, %v282_v62  ;;  %v306_v23 = vsel %vm221_vm7, %v305_v20, %v281_v61 }
  0xbe   : > { %v308_v24 = vsel %vm220_vm8, 0, %v306_v23 }
  0xbf   : > { %v285_v0 = vsub.s32 0, %v283_v63  ;;  %v416_v25 = vadd.s32 3, %v308_v24  ;;  %v312_v26 = vand.u32 3, %v308_v24 }
  0xc1   : > { %v576_v1 = vmin.u32 %v285_v0, %v283_v63  ;;  %v417_v27 = vand.u32 3, %v416_v25  ;;  %vm317_vm9 = vcmp.eq.s32.totalorder %v312_v26, 2  ;;  %vm314_vm11 = vcmp.eq.s32.totalorder %v312_v26, 0 }
  0xc2   : > { %vm313_vm13 = vcmp.lt.s32.totalorder %v312_v26, 2 }
  0xc3   : > { %v287_v2 = vclz %v576_v1  ;;  %vm422_vm10 = vcmp.eq.s32.totalorder %v417_v27, 2  ;;  %vm419_vm12 = vcmp.eq.s32.totalorder %v417_v27, 0  ;;  %vm418_vm14 = vcmp.lt.s32.totalorder %v417_v27, 2 }
  0xc5   : > { %v577_v3 = vadd.s32 4294967294, %v287_v2 }
  0xc7   : > { %vm578_vm6 = vcmp.lt.s32.totalorder %v577_v3, 0 }
  0xc8   : > { %v290_v4 = vsel %vm578_vm6, 0, %v577_v3 }
  0xc9   : > { %v291_v7 = vsub.s32 32, %v290_v4  ;;  %v295_v8 = vsub.s32 4294967266, %v290_v4  ;;  %v292_v9 = vshll.u32 %v283_v63, %v290_v4 }
  0xcb   : > { %v293_v11 = vshrl.u32 %v275_v6, %v291_v7  ;;  %v296_v12 = vadd.s32 127, %v295_v8 }
  0xcd   : > { %v294_v13 = vor.u32 %v293_v11, %v292_v9  ;;  %v297_v14 = vshll.u32 %v296_v12, 23 }
  0xcf   : > { %v298_v15 = vor.u32 4788187, %v297_v14  ;;  %v301_v17 = vcvt.s32.f32 %v294_v13 }
  0xd1   : > { %v299_v16 = vand.u32 2147483647, %v298_v15 }
  0xd3   : > { %v302_v18 = vmul.f32 %v301_v17, %v299_v16 }
  0xd5   : > { %v303_v19 = vxor.u32 2147483648, %v302_v18 }
  0xd7   : > { %v304_v21 = vsel %vm221_vm7, %v303_v19, %v302_v18 }
  0xd8   : > { %v307_v22 = vsel %vm220_vm8, %v865_v5, %v304_v21 }
  0xd9   : > { %661 = vcosq.f32 %v307_v22 }
  0xda   : > { %663 = vsinq.f32 %v307_v22 }
  0xe6   : > { %v662_v28 = vpop.eup %661 }
  0xe7   : > { %v664_v29 = vpop.eup %663  ;;  %v318_v30 = vxor.u32 2147483648, %v662_v28 }
  0xe8   : > { %v315_v31 = vxor.u32 2147483648, %v664_v29 }
  0xe9   : > { %v319_v10 = vsel %vm317_vm9, %v318_v30, %v664_v29  ;;  %v424_v32 = vsel %vm422_vm10, %v318_v30, %v664_v29 }
  0xea   : > { %v316_v33 = vsel %vm314_vm11, %v662_v28, %v315_v31  ;;  %v421_v34 = vsel %vm419_vm12, %v662_v28, %v315_v31 }
  0xeb   : > { %v320_v35 = vsel %vm313_vm13, %v316_v33, %v319_v10  ;;  %v425_v36 = vsel %vm418_vm14, %v421_v34, %v424_v32 }
  0xec   : > { %v321_v37 = vsel %vm311_vm15, nan, %v320_v35  ;;  %v426_v38 = vsel %vm311_vm15, nan, %v425_v36 }
  0xed   : > { %322 = vst [vmem:[%s189_s9] sm:$0xff] %v321_v37  ;;  %427 = vst [vmem:[%s196_s11] sm:$0xff] %v426_v38 }
  0xee   : > { %678 = shalt.err (!%p675_p5)
}
  0xef   : > { %s679_s7 = scalar_lea.hbm %s893_s23, 128  ;;  %s683_s11 = scalar_lea.hbm %s971_s2, 256 }
  0xf0   : > { %p680_p6 = scmp.ne.s32.totalorder %s893_s23, %s679_s7  ;;  %p684_p10 = scmp.lt.s32.totalorder %s893_s23, %s971_s2 }
  0xf1   : > { %p685_p11 = scmp.lt.s32.totalorder %s683_s11, %s679_s7 }
  0xf2   : > { %p681_p7 = pnand %p680_p6, %p842_p4 }
  0xf3   : > { %p686_p12 = por %p685_p11, %p684_p10 }
  0xf4   : > { %p682_p9 = pneg %p681_p7 }
  0xf6   : > { %p687_p13 = pnand %p686_p12, %p682_p9 }
  0xf8   : > { %690 = shalt.err (!%p687_p13)
}
  0xf9   : > { %593 = dma.vmem_to_hbm [thread:$0]  (%p842_p4), %s896_s10, 128, %s893_s23, %s429_s28  }
  0xfa   : > { %s434_s15 = scalar_lea.sflag [#allocation5], %s886_s6  ;;  %s691_s26 = scalar_lea.vmem %s903_s18, 128 }
  0xfb   : > { %p692_p0 = scmp.ne.s32.totalorder %s903_s18, %s691_s26  ;;  %s781_s29 = smov [#allocation4]  }
  0xfc   : > { %s695_s30 = sshll.u32 %s781_s29, 4  ;;  %s696_s30 = int_to_ptr.vmem [resolvable:$false] %s695_s30 }
  0xfd   : > { %p693_p1 = pnand %p692_p0, %p842_p4  ;;  %s697_s4 = scalar_lea.vmem %s696_s30, 256 }
  0xfe   : > { %p698_p3 = scmp.lt.s32.totalorder %s903_s18, %s696_s30  ;;  %p699_p5 = scmp.lt.s32.totalorder %s697_s4, %s691_s26 }
  0xff   : > { %p694_p2 = pneg %p693_p1 }
 0x100   : > { %p700_p6 = por %p699_p5, %p698_p3 }
 0x102   : > { %p701_p7 = pnand %p700_p6, %p694_p2 }
 0x104   : > { %704 = shalt.err (!%p701_p7)
}
 0x105   : > { %s705_s10 = scalar_lea.hbm %s901_s27, 128  ;;  %s709_s28 = scalar_lea.hbm %s972_s3, 256 }
 0x106   : > { %p706_p9 = scmp.ne.s32.totalorder %s901_s27, %s705_s10  ;;  %p710_p12 = scmp.lt.s32.totalorder %s901_s27, %s972_s3 }
 0x107   : > { %p711_p13 = scmp.lt.s32.totalorder %s709_s28, %s705_s10 }
 0x108   : > { %p707_p10 = pnand %p706_p9, %p842_p4 }
 0x109   : > { %p712_p0 = por %p711_p13, %p710_p12 }
 0x10a   : > { %p708_p11 = pneg %p707_p10 }
 0x10c   : > { %p713_p1 = pnand %p712_p0, %p708_p11 }
 0x10e   : > { %716 = shalt.err (!%p713_p1)
}
 0x10f   : > { %594 = dma.vmem_to_hbm [thread:$0]  (%p842_p4), %s903_s18, 128, %s901_s27, %s434_s15  }
 0x110 PF: > { %p604_p2 = scmp.ge.s32.totalorder %s771_s17, 2  ;;  %s474_s8 = sand.u32 1, %s751_s12  }
 0x111   : > { %s475_s9 = scalar_lea.sflag [#allocation3], %s474_s8 }
 0x112   : > { %p598_p3 = pnand %p604_p2, %p849_p8 }
 0x114   : > { %p599_p5 = pneg %p598_p3 }
 0x116   : > { %742 = dma.done.wait (%p599_p5), %s475_s9, 128  }
 0x117   : > { %744 = vsyncadd (%p599_p5), %s475_s9, 4294967168  ;;  %s484_s11 = scalar_lea.sflag [#allocation5], %s474_s8 }
 0x118   : > { %746 = dma.done.wait (%p599_p5), %s484_s11, 128  }
 0x119   : > { %748 = vsyncadd (%p599_p5), %s484_s11, 4294967168  ;;  %s20_s17 = sadd.s32 1, %s771_s17   ;;  %s975_s12 = smov %s755_s13 }
 0x11a   : > { %p17_p6 = scmp.ge.s32.totalorder %s20_s17, 4   ;;  %s976_s13 = smov %s759_s14 }
 0x11b   : > { %s977_s14 = smov %s855_s25  ;;  %s978_s15 = smov %s767_s16 }
 0x11c   : > { %s979_s16 = smov %s981_s20  ;;  %19 = sbr.rel (!%p17_p6) target bundleno = 6 (0x6), region = 80 }
 0x121   :  { %489 = vsyncpa [#allocation3], 1 }
 0x122   :  { %491 = vsyncpa [#allocation3 + $0x1], 1 }
 0x123   :  { %492 = vsyncpa [#allocation5], 1 }
 0x124   :  { %494 = vsyncpa [#allocation5 + $0x1], 1 }

</bundles_post_ra>
